<compile_context>
chip_gen: v5e
topology: v5e:2x2
jax: 0.10.0
libtpu: 0.0.40
codegen_flags: <defaults>
</compile_context>

<pallas_src>
import functools

import numpy as np

import jax
import jax.numpy as jnp
from jax.experimental import pallas as pl
from jax.experimental.pallas import tpu as pltpu

_VMEM_LIMIT   = 32 * 1024 * 1024   # <= default scoped limit on v6e/v7x, safe on v5e (128 MiB phys)
_BLOCK_TARGET = 1536 * 1024        # ~1.5 MiB of in+out+acc bytes per grid step (HBM-bound sweet spot)
_BLOCK_CAP    = 4 * 1024 * 1024    # never let a single step exceed this
_MIN_STEPS    = 8                  # deep enough pipeline to hide DMA ramp-up / writeback ramp-down
_MAT_CAP      = 2 * 1024 * 1024    # dense replication/pool matrix bigger than this -> skip Pallas


def _matmul_kernel(x_ref, m_ref, o_ref):
    o_ref[...] = jnp.dot(
        x_ref[...], m_ref[...], preferred_element_type=jnp.float32
    ).astype(o_ref.dtype)


def _k_cap(itemsize, mode):
    """Cap on the contraction depth K so the 'free matmul' never becomes MXU-bound.

    Intensity is ~0.4*K (up) / ~0.1*K (down) FLOP/byte for 4-byte dtypes; these caps
    keep it <= ~26 FLOP/byte for f32 (weak fp32 MXU on v5e, fast HBM on v7x) and
    <= ~102 for bf16 -- safely under the HBM/MXU ridge on v5e, v6e and v7x.
    """
    scale = max(1, 4 // itemsize)          # 1 for f32, 2 for bf16, 4 for int8/fp8
    return (64 if mode == "up" else 256) * scale


def _pick_fold(max_k, lane_unit, cap):
    """Largest k dividing max_k with input lane width k*lane_unit <= cap."""
    ks = [k for k in range(1, max_k + 1) if max_k % k == 0 and k * lane_unit <= cap]
    return max(ks) if ks else 1


def _pick_row_tile(rows, per_row_bytes, unit):
    """Row tile dividing `rows`: fits the per-step budget, prefers >=_MIN_STEPS grid
    steps (pipeline depth) and an even step count (v7x two-TC balance), then the
    block size closest to _BLOCK_TARGET."""
    cands = [d for d in range(unit, rows + 1, unit) if rows % d == 0]
    if not cands:
        return rows                        # full-array block is always a legal BlockSpec
    best_key, best_rt = None, rows
    for rt in cands:
        steps = rows // rt
        blk = rt * per_row_bytes
        key = (blk > _BLOCK_CAP,           # must fit the per-step budget
               steps < _MIN_STEPS,         # deep pipeline to hide ramp-up/ramp-down
               steps % 2 != 0,             # even steps: both v7x TensorCores stay busy
               abs(blk - _BLOCK_TARGET))   # then: block size near the ~1.5 MiB sweet spot
        if best_key is None or key < best_key:
            best_key, best_rt = key, rt
    return best_rt


def _rowwise_matmul(x2, mat_np):
    """out[rows, l_out] = x2[rows, l_in] @ mat  (Pallas), or None if it can't be tiled sanely."""
    rows, l_in = x2.shape
    l_out = mat_np.shape[1]
    itemsize = x2.dtype.itemsize
    # Per-step resident bytes per row: input block + output block + f32 dot intermediate
    per_row = (l_in + l_out) * itemsize + l_out * 4
    unit = 8 * max(1, 4 // itemsize)       # sublane multiple: 8 f32, 16 bf16, 32 int8/fp8
    rt = _pick_row_tile(rows, per_row, unit)
    if rt * per_row > 3 * _BLOCK_CAP:      # untileable full block would blow VMEM
        return None
    grid = (rows // rt,)
    mat = jnp.asarray(mat_np)              # numpy constant -> baked into the program, DMA'd once
    cost = pl.CostEstimate(                # tell XLA this op is memory-bound (matmul FLOPs are artificial)
        flops=0,
        transcendentals=0,
        bytes_accessed=int(rows * (l_in + l_out) * itemsize + l_in * l_out * itemsize),
    )
    return pl.pallas_call(
        _matmul_kernel,
        out_shape=jax.ShapeDtypeStruct((rows, l_out), x2.dtype),
        grid=grid,
        in_specs=[
            pl.BlockSpec((rt, l_in), lambda i: (i, 0)),
            pl.BlockSpec((l_in, l_out), lambda i: (0, 0)),   # constant block: fetched once
        ],
        out_specs=pl.BlockSpec((rt, l_out), lambda i: (i, 0)),
        compiler_params=pltpu.CompilerParams(
            dimension_semantics=("parallel",),
            vmem_limit_bytes=_VMEM_LIMIT,
        ),
        cost_estimate=cost,
    )(x2, mat)


def _upsample_matrix(k, w, dtype):
    """(k*W, 4*k*W) 0/1 matrix: a group of k image rows -> its 2x-nearest-upsampled group."""
    l_in, l_out = k * w, 4 * k * w
    src = np.arange(l_in)
    src_m, src_w = src // w, src % w
    col = np.arange(l_out)
    col_m = col // (4 * w)                  # which source row inside the group
    col_w = (col % (2 * w)) // 2            # which source column
    m = (col_m[None, :] == src_m[:, None]) & (col_w[None, :] == src_w[:, None])
    return m.astype(np.float32).astype(dtype)


def _avgpool_matrix(k, w, dtype):
    """(2*k*W, k*W//2) 0.25 matrix: a group of 2k image rows -> its 2x2-avg-pooled group."""
    l_in, l_out = 2 * k * w, (k * w) // 2
    src = np.arange(l_in)
    src_m, src_w = src // w, src % w
    col = np.arange(l_out)
    col_p, col_j = col // (w // 2), col % (w // 2)
    m = (col_p[None, :] == (src_m // 2)[:, None]) & (col_j[None, :] == (src_w // 2)[:, None])
    return (m.astype(np.float32) * 0.25).astype(dtype)


def _jnp_fallback(x, mode):
    # TODO(synk): very wide images (dense matrix > _MAT_CAP) go through XLA; a W-tiled
    # Pallas variant with in-kernel strided lane stores would be preferable there.
    if mode == "up":
        return jnp.repeat(jnp.repeat(x, 2, axis=2), 2, axis=3)
    n, c, h, w = x.shape
    return x.reshape(n, c, h // 2, 2, w // 2, 2).mean(axis=(3, 5)).astype(x.dtype)


@functools.partial(jax.jit, static_argnames=("sampling_type",))
def sample_block(x_nchw, *, sampling_type=None, t=None):
    """Pallas equivalent of SampleBlock.forward(x, t). Input/output are NCHW."""
    del t
    if sampling_type not in ("up", "down"):
        return x_nchw                                    # nn.Identity(): bypass Pallas

    n, c, h, w = x_nchw.shape
    itemsize = x_nchw.dtype.itemsize

    if sampling_type == "up":
        k = _pick_fold(h, w, _k_cap(itemsize, "up"))     # input lane width = k*W
        l_in, l_out = k * w, 4 * k * w
        if l_in * l_out * itemsize > _MAT_CAP:
            return _jnp_fallback(x_nchw, "up")
        rows = n * c * (h // k)
        out2 = _rowwise_matmul(x_nchw.reshape(rows, l_in),            # free reshape in
                               _upsample_matrix(k, w, x_nchw.dtype))
        if out2 is None:
            return _jnp_fallback(x_nchw, "up")
        return out2.reshape(n, c, 2 * h, 2 * w)                       # free reshape out

    # "down"
    assert h % 2 == 0 and w % 2 == 0, "AvgPool2d(2,2) needs even H, W"
    k = _pick_fold(h // 2, 2 * w, _k_cap(itemsize, "down"))           # input lane width = 2*k*W
    l_in, l_out = 2 * k * w, (k * w) // 2
    if l_in * l_out * itemsize > _MAT_CAP:
        return _jnp_fallback(x_nchw, "down")
    rows = n * c * (h // (2 * k))
    out2 = _rowwise_matmul(x_nchw.reshape(rows, l_in),
                           _avgpool_matrix(k, w, x_nchw.dtype))
    if out2 is None:
        return _jnp_fallback(x_nchw, "down")
    return out2.reshape(n, c, h // 2, w // 2)


if __name__ == "__main__":
    # SampleBlock has no learnable parameters (Upsample / AvgPool / Identity).
    key = jax.random.PRNGKey(0)
    n, c, h, w = 2, 4, 16, 16
    x = jax.random.normal(key, (n, c, h, w), dtype=jnp.float32)

    # up: nn.Upsample(scale_factor=2, mode='nearest')
    y_up = jax.block_until_ready(sample_block(x, sampling_type="up"))
    ref_up = jnp.repeat(jnp.repeat(x, 2, axis=2), 2, axis=3)
    assert y_up.shape == (n, c, 2 * h, 2 * w)
    assert jnp.allclose(y_up, ref_up), "upsample mismatch"

    # down: nn.AvgPool2d(kernel_size=2, stride=2)
    y_dn = jax.block_until_ready(sample_block(x, sampling_type="down"))
    ref_dn = x.reshape(n, c, h // 2, 2, w // 2, 2).mean(axis=(3, 5))
    assert y_dn.shape == (n, c, h // 2, w // 2)
    assert jnp.allclose(y_dn, ref_dn, atol=1e-6), "avgpool mismatch"

    # default: nn.Identity()
    y_id = jax.block_until_ready(sample_block(x))
    assert y_id.shape == (n, c, h, w)
    assert jnp.allclose(y_id, x), "identity mismatch"

    print("KERNEL_OK")
</pallas_src>

<mosaic_0001>
module attributes {stable_mosaic.version = 11 : i64} {
  func.func @_matmul_kernel(%arg0: i32, %arg1: memref<16x64xf32, #tpu.memory_space<vmem>>, %arg2: memref<64x256xf32, #tpu.memory_space<vmem>>, %arg3: memref<16x256xf32, #tpu.memory_space<vmem>>) attributes {dimension_semantics = [#tpu.dimension_semantics<parallel>], iteration_bounds = array<i64: 2>, scalar_prefetch = 0 : i64, scratch_operands = 0 : i64, tpu.core_type = #tpu.core_type<tc>, window_params = [{transform_indices = @transform_0, window_bounds = array<i64: 16, 64>}, {pipeline_mode = #tpu.pipeline_mode<synchronous>, transform_indices = @transform_1, window_bounds = array<i64: 64, 256>}, {transform_indices = @transform_2, window_bounds = array<i64: 16, 256>}]} {
    %c0 = arith.constant 0 : index
    %c0_0 = arith.constant 0 : index
    %0 = vector.load %arg1[%c0, %c0_0] : memref<16x64xf32, #tpu.memory_space<vmem>>, vector<16x64xf32>
    %c0_1 = arith.constant 0 : index
    %c0_2 = arith.constant 0 : index
    %1 = vector.load %arg2[%c0_1, %c0_2] : memref<64x256xf32, #tpu.memory_space<vmem>>, vector<64x256xf32>
    %cst = arith.constant dense<0.000000e+00> : vector<16x256xf32>
    %2 = tpu.matmul %0, %1, %cst {dimension_numbers = #tpu.dot_dimension_numbers<[1], [0], [0], [1], [0, 0, 1, 1], [], []>} : vector<16x64xf32>, vector<64x256xf32>, vector<16x256xf32> -> vector<16x256xf32>
    %c0_3 = arith.constant 0 : index
    %c0_4 = arith.constant 0 : index
    %3 = vector.load %arg3[%c0_3, %c0_4] : memref<16x256xf32, #tpu.memory_space<vmem>>, vector<16x256xf32>
    tpu.vector_store %arg3[%c0_3, %c0_4], %2 {strides = array<i32>} : memref<16x256xf32, #tpu.memory_space<vmem>>, vector<16x256xf32>,
    return
  }
  func.func @transform_0(%arg0: i32) -> (i32, i32) {
    %c0_i32 = arith.constant 0 : i32
    %c0_i32_0 = arith.constant 0 : i32
    return %arg0, %c0_i32 : i32, i32
  }
  func.func @transform_1(%arg0: i32) -> (i32, i32) {
    %c0_i32 = arith.constant 0 : i32
    %c0_i32_0 = arith.constant 0 : i32
    %c0_i32_1 = arith.constant 0 : i32
    return %c0_i32, %c0_i32_0 : i32, i32
  }
  func.func @transform_2(%arg0: i32) -> (i32, i32) {
    %c0_i32 = arith.constant 0 : i32
    %c0_i32_0 = arith.constant 0 : i32
    return %arg0, %c0_i32 : i32, i32
  }
}

</mosaic_0001>

<bundles_post_ra>
// kernel: sample_block.1
= control target key start
LH: loop header
LB: loop body
LE: loop exit
PB: predicated region body
PF: predicated region fallthrough
CT: control target
= control target key end

     0   :  { %s346_s9 = smov 0   ;;  %s415_s0 = inlined_call_operand.vmem [shape: f32[32,64], index: 0, kind: input, shape index: {}]   ;;  %s416_s1 = inlined_call_operand.vmem [shape: f32[64,256], index: 1, kind: input, shape index: {}]   ;;  %s417_s2 = inlined_call_operand.vmem [shape: f32[32,256], index: 2, kind: output, shape index: {}]  }
   0x1 LB: > { %s282_s10 = sadd.s32 4294967295, %s329_s9   ;;  %p286_p0 = scmp.ge.s32.totalorder %s329_s9, 1  ;;  %s329_s9 = sphi %s346_s9, %s12_s9  }
   0x2   : > { %p113_p1 = scmp.lt.s32.totalorder %s329_s9, 3 }
   0x4   : > { %p114_p2 = pnand %p286_p0, %p113_p1 }
   0x5   : > { %s287_s17 = sshll.u32 (!%p114_p2), %s282_s10, 1 }
   0x6   : > { %117 = sbr.rel (%p114_p2) target bundleno = 161 (0xa1), region = 28  ;;  %p137_p3 = scmp.lt.s32.totalorder (!%p114_p2), %s287_s17, 3 }
   0xb   : > { %v165_v0 = vld [vmem:[%s416_s1 + $0x70] sm:$0xff]  ;;  %v166_v1 = vld [vmem:[%s416_s1 + $0x78] sm:$0xff]  ;;  %v163_v2 = vld [vmem:[%s416_s1 + $0x60] sm:$0xff]  ;;  %s419_s17 = smov (!%p137_p3, %s287_s17), 3  ;;  %vm167_vm0 = vcmask 523264  }
   0xc   : > { %299 = vmatpush.msra.mxu2 %v165_v0  ;;  %307 = vmatpush.msra.mxu3 %v166_v1  ;;  %v164_v3 = vld [vmem:[%s416_s1 + $0x68] sm:$0xff]  ;;  %v161_v4 = vld [vmem:[%s416_s1 + $0x50] sm:$0xff]  ;;  %v162_v5 = vld [vmem:[%s416_s1 + $0x58] sm:$0xff]  ;;  %s288_s4 = sshll.u32 %s419_s17, 3  ;;  %s298_s22 = sshll.u32 %s419_s17, 4 }
   0xd   : > { %182 = vmatpush.msra.mxu0 %v165_v0  ;;  %205 = vmatpush.msra.mxu1 %v166_v1  ;;  %v159_v6 = vld [vmem:[%s416_s1 + $0x40] sm:$0xff]  ;;  %v160_v7 = vld [vmem:[%s416_s1 + $0x48] sm:$0xff]  ;;  %v157_v8 = vld [vmem:[%s416_s1 + $0x30] sm:$0xff]  ;;  %s140_s16 = scalar_lea.vmem %s415_s0, %s288_s4  ;;  %s147_s25 = scalar_lea.vmem %s417_s2, %s298_s22 }
   0xe   : > { %300 = vmatpush.msra.mxu2 %v163_v2  ;;  %308 = vmatpush.msra.mxu3 %v164_v3  ;;  %v158_v9 = vld [vmem:[%s416_s1 + $0x38] sm:$0xff]  ;;  %v155_v10 = vld [vmem:[%s416_s1 + $0x20] sm:$0xff]  ;;  %v156_v11 = vld [vmem:[%s416_s1 + $0x28] sm:$0xff] }
   0xf   : > { %183 = vmatpush.msra.mxu0 %v163_v2  ;;  %206 = vmatpush.msra.mxu1 %v164_v3  ;;  %v153_v12 = vld [vmem:[%s416_s1 + $0x10] sm:$0xff]  ;;  %v154_v13 = vld [vmem:[%s416_s1 + $0x18] sm:$0xff]  ;;  %v151_v14 = vld [vmem:[%s416_s1] sm:$0xff] }
  0x10   : > { %301 = vmatpush.msra.mxu2 %v161_v4  ;;  %309 = vmatpush.msra.mxu3 %v162_v5  ;;  %v152_v15 = vld [vmem:[%s416_s1 + $0x8] sm:$0xff]  ;;  %v149_v17 = vld [vmem:[%s140_s16] sm:$0xff] }
  0x11   : > { %184 = vmatpush.msra.mxu0 %v161_v4  ;;  %207 = vmatpush.msra.mxu1 %v162_v5  ;;  %v150_v16 = vld [vmem:[%s140_s16 + $0x8] sm:$0xff] }
  0x12   : > { %302 = vmatpush.msra.mxu2 %v159_v6  ;;  %310 = vmatpush.msra.mxu3 %v160_v7 }
  0x13   : > { %185 = vmatpush.msra.mxu0 %v159_v6  ;;  %208 = vmatpush.msra.mxu1 %v160_v7 }
  0x14   : > { %303 = vmatpush.msra.mxu2 %v157_v8  ;;  %311 = vmatpush.msra.mxu3 %v158_v9 }
  0x15   : > { %186 = vmatpush.msra.mxu0 %v157_v8  ;;  %209 = vmatpush.msra.mxu1 %v158_v9 }
  0x16   : > { %304 = vmatpush.msra.mxu2 %v155_v10  ;;  %312 = vmatpush.msra.mxu3 %v156_v11 }
  0x17   : > { %187 = vmatpush.msra.mxu0 %v155_v10  ;;  %210 = vmatpush.msra.mxu1 %v156_v11 }
  0x18   : > { %305 = vmatpush.msra.mxu2 %v153_v12  ;;  %313 = vmatpush.msra.mxu3 %v154_v13 }
  0x19   : > { %188 = vmatpush.msra.mxu0 %v153_v12  ;;  %211 = vmatpush.msra.mxu1 %v154_v13 }
  0x1a   : > { %306 = vmatpush.msra.mxu2 %v151_v14  ;;  %314 = vmatpush.msra.mxu3 %v152_v15 }
  0x1b   : > { %293 = vmatmul.msk.f32.vlgmr.msra.gmra.mxu2 %vm167_vm0, %v150_v16  ;;  %295 = vmatmul.msk.f32.vlgmr.msra.gmra.mxu3 %vm167_vm0, %v150_v16 }
  0x1c   : > { %189 = vmatpush.msra.mxu0 %v151_v14  ;;  %212 = vmatpush.msra.mxu1 %v152_v15 }
  0x1d   : > { %292 = vmatmul.msk.f32.vlgmr.msra.gmra.mxu0 %vm167_vm0, %v149_v17  ;;  %294 = vmatmul.msk.f32.vlgmr.msra.gmra.mxu1 %vm167_vm0, %v149_v17 }
  0x9a   : > { %v191_v18 = vpop.f32.mrf.mxu0  ;;  %v214_v19 = vpop.f32.mrf.mxu1 }
  0x9b   : > { %220 = vst [vmem:[%s147_s25] sm:$0xff] %v191_v18 }
  0x9c   : > { %221 = vst [vmem:[%s147_s25 + $0x8] sm:$0xff] %v214_v19 }
  0x9e   : > { %v194_v20 = vpop.f32.mrf.mxu2  ;;  %v217_v21 = vpop.f32.mrf.mxu3 }
  0x9f   : > { %222 = vst [vmem:[%s147_s25 + $0x10] sm:$0xff] %v194_v20 }
  0xa0   : > { %223 = vst [vmem:[%s147_s25 + $0x18] sm:$0xff] %v217_v21 }
  0xa1 PF: > { %s12_s9 = sadd.s32 1, %s329_s9  }
  0xa2   : > { %p9_p4 = scmp.ge.s32.totalorder %s12_s9, 4  }
  0xa4   :  { %11 = sbr.rel (!%p9_p4) target bundleno = 1 (0x1), region = 58 }

</bundles_post_ra>
